<compile_context>
chip_gen: v7x
topology: tpu7x:2x2x1
jax: 0.10.0
libtpu: 0.0.40
codegen_flags: <defaults>
</compile_context>

<pallas_src>
import functools

import jax
import jax.numpy as jnp
from jax.experimental import pallas as pl
from jax.experimental.pallas import tpu as pltpu


def _leaky(v):
    # nn.LeakyReLU() default negative_slope = 0.01
    return jnp.where(v > 0, v, 0.01 * v)


def _round_up(n, m):
    return ((n + m - 1) // m) * m


def _round_up16(n):
    return _round_up(n, 16)


# ----------------------------------------------------------------------------- weight packing
def _weight_layout(C, H, D):
    """Row offsets of each weight block inside the packed bf16 slab (width = 128 lanes).

    Every block starts on a 16-row boundary (bf16 min tile is (16,128)) so static slices
    feeding the MXU never straddle packed sublane pairs.
    """
    W = 2 * D
    blocks = [("gw1", C, H), ("gw2", H, H), ("w1m", H, W), ("w1x", H, W),
              ("hw2", W, W), ("hw3", W, 128)]   # hw3 cols padded to 128 -> lane-dense output
    offs, r = {}, 0
    for name, rows, cols in blocks:
        offs[name] = (r, rows, cols)
        r += _round_up16(rows)
    return offs, r


def pack_params(params, C, H, D):
    """Pack all weights into ONE bf16 slab and all biases into ONE f32 [8,128] slab.

    Called ONCE (weights are static across forward calls).
    Chi0/Rp heads are fused: concatenated W1 (split into mean/max parts), block-diagonal W2/W3,
    concatenated biases.
    """
    offs, total_rows = _weight_layout(C, H, D)
    W = 2 * D
    LANES = 128
    zDD = jnp.zeros((D, D), jnp.float32)
    zD1 = jnp.zeros((D, 1), jnp.float32)

    w1 = jnp.concatenate([params["cw1"], params["rw1"]], axis=1)          # [2H, 2D]
    mats = {
        "gw1": params["gw1"],
        "gw2": params["gw2"],
        "w1m": w1[:H],                                                     # mean-pool part
        "w1x": w1[H:],                                                     # max-pool part
        "hw2": jnp.concatenate(
            [jnp.concatenate([params["cw2"], zDD], axis=1),
             jnp.concatenate([zDD, params["rw2"]], axis=1)], axis=0),      # [2D, 2D]
        "hw3": jnp.concatenate(
            [jnp.concatenate([params["cw3"], zD1], axis=1),
             jnp.concatenate([zD1, params["rw3"]], axis=1)], axis=0),      # [2D, 2]
    }

    wpk = jnp.zeros((total_rows, LANES), jnp.float32)
    for name, (r0, _rows, _cols) in offs.items():
        m = mats[name]
        wpk = wpk.at[r0:r0 + m.shape[0], :m.shape[1]].set(m)
    wpk = wpk.astype(jnp.bfloat16)

    bpk = jnp.zeros((8, LANES), jnp.float32)
    bpk = bpk.at[0:1, :H].set(params["gb1"])
    bpk = bpk.at[1:2, :H].set(params["gb2"])
    bpk = bpk.at[2:3, :W].set(jnp.concatenate([params["cb1"], params["rb1"]], axis=1))
    bpk = bpk.at[3:4, :W].set(jnp.concatenate([params["cb2"], params["rb2"]], axis=1))
    bpk = bpk.at[4:5, :2].set(jnp.concatenate([params["cb3"], params["rb3"]], axis=1))
    return wpk, bpk


# ----------------------------------------------------------------------------- data packing
def pack_data(X, P, Mmask, maskT):
    """Sublane-stack per-call bf16 data (X, P, Mmask, maskT) into ONE slab.

    Sections are 16-row aligned; lane width is a full 128 (zero padded).  Returns the slab and
    the static row offsets of each section.
    """
    N, C = X.shape
    G_pad = Mmask.shape[0]
    lanes = max(128, _round_up(max(N, C, G_pad), 128))
    rN = _round_up16(N)
    rG = _round_up16(G_pad)

    def pad(a, rows):
        return jnp.pad(a, ((0, rows - a.shape[0]), (0, lanes - a.shape[1])))

    slab = jnp.concatenate(
        [pad(X, rN), pad(P, rN), pad(Mmask, rG), pad(maskT, rN)], axis=0
    ).astype(jnp.bfloat16)
    offs = (0, rN, 2 * rN, 2 * rN + rG)          # x0, p0, m0, t0
    return slab, offs


# ----------------------------------------------------------------------------- kernel
def make_kernel(N, C, H, D, G, G_pad, w_offs, d_offs):
    W = 2 * D
    f32, bf16 = jnp.float32, jnp.bfloat16
    x0, p0, m0, t0 = d_offs

    def slab(w_ref, name):
        r0, rows, cols = w_offs[name]
        return w_ref[r0:r0 + rows, 0:cols]

    def kernel(d_ref, w_ref, b_ref, out_ref):
        # ---- per-call data (one bf16 slab) ----
        x = d_ref[x0:x0 + N, 0:C]                        # [N, C]      bf16
        P = d_ref[p0:p0 + N, 0:N]                        # [N, N]      bf16
        maskg = d_ref[m0:m0 + G_pad, 0:N]                # [G_pad, N]  bf16 (0/1)
        maskT = d_ref[t0:t0 + N, 0:G_pad].astype(f32)    # [N, G_pad]  f32  (0/1)

        # ---- static weights / biases ----
        gw1 = slab(w_ref, "gw1"); gw2 = slab(w_ref, "gw2")
        w1m = slab(w_ref, "w1m"); w1x = slab(w_ref, "w1x")
        hw2 = slab(w_ref, "hw2"); hw3 = slab(w_ref, "hw3")   # [W, 128] (cols 2.. are zero)

        gb1 = b_ref[0:1, 0:H]; gb2 = b_ref[1:2, 0:H]
        hb1 = b_ref[2:3, 0:W]; hb2 = b_ref[3:4, 0:W]
        hb3 = b_ref[4:5, :]                                  # [1, 128] (cols 2.. are zero)

        # ---- GCNConv 1: LeakyReLU(P @ (X W1) + b1); bf16 MXU operands, f32 accumulation ----
        h = jnp.dot(x, gw1, preferred_element_type=f32)
        h = jnp.dot(P, h.astype(bf16), preferred_element_type=f32) + gb1
        h = _leaky(h)

        # ---- GCNConv 2 ----
        h = jnp.dot(h.astype(bf16), gw2, preferred_element_type=f32)
        h = jnp.dot(P, h.astype(bf16), preferred_element_type=f32) + gb2
        h = _leaky(h)                                        # [N, H] f32

        # ---- global mean pool: bf16 mask matmul + f32 1/count scaling (Mmean input dropped) ----
        counts = jnp.sum(maskg.astype(f32), axis=1, keepdims=True)         # [G_pad, 1]
        inv = jnp.where(counts > 0.0, 1.0 / jnp.maximum(counts, 1.0), 0.0)
        mean_out = jnp.dot(maskg, h.astype(bf16), preferred_element_type=f32) * inv   # [G_pad, H]

        # ---- global max pool: additive mask, sublane max-reduce, rows placed via VPU select ----
        rowid = jax.lax.broadcasted_iota(jnp.int32, (G_pad, H), 0)
        max_out = jnp.zeros((G_pad, H), f32)
        for g in range(G):                                   # G is tiny and static
            m = maskT[:, g:g + 1]                            # [N, 1] (mask on sublane axis)
            v = jnp.max(h + (m - 1.0) * 1e30, axis=0, keepdims=True)       # [1, H]
            v = jnp.where(counts[g:g + 1, :] > 0.0, v, 0.0)  # empty graph -> 0, not -1e30
            max_out = jnp.where(rowid == g, v, max_out)

        # ---- fused Chi0/Rp head (pooled-concat folded into split W1) ----
        y = (jnp.dot(mean_out.astype(bf16), w1m, preferred_element_type=f32)
             + jnp.dot(max_out.astype(bf16), w1x, preferred_element_type=f32)
             + hb1)
        y = _leaky(y)
        y = _leaky(jnp.dot(y.astype(bf16), hw2, preferred_element_type=f32) + hb2)
        # hw3/hb3 are lane-padded to 128 -> dense [G_pad, 128] store (col 0 = Chi0, col 1 = Rp).
        out_ref[...] = jnp.dot(y.astype(bf16), hw3, preferred_element_type=f32) + hb3

    return kernel


# ----------------------------------------------------------------------------- glue
def build_propagation_matrix(edge_index, edge_weight, num_nodes):
    """Dense GCN propagation matrix reproducing the forward's edge processing.

    Forward semantics: add_self_loops (weight 1), keep only edges with dst > src (drops the added
    self loops again).  Inside GCNConv, gcn_norm re-adds self loops (weight 1), computes in-degree
    over targets and applies symmetric deg^{-1/2}.
    """
    src, dst = edge_index[0], edge_index[1]
    w_eff = jnp.where(dst > src, edge_weight, 0.0)
    A = jnp.zeros((num_nodes, num_nodes), jnp.float32).at[dst, src].add(w_eff)
    A = A + jnp.eye(num_nodes, dtype=jnp.float32)
    deg = jnp.sum(A, axis=1)
    dinv = jnp.where(deg > 0, deg ** -0.5, 0.0)
    return dinv[:, None] * A * dinv[None, :]


@functools.partial(jax.jit, static_argnames=("num_graphs", "n_dense", "gcn"))
def model_forward(wpk, bpk, X, edge_index, edge_weight, batching, *,
                  num_graphs, n_dense=32, gcn=16):
    N, C = X.shape
    H, D, G = gcn, n_dense, num_graphs
    G_pad = max(8, _round_up(G, 8))

    P = build_propagation_matrix(edge_index, edge_weight, N)
    onehot = (batching[None, :] == jnp.arange(G)[:, None]).astype(jnp.float32)   # [G, N]
    Mmask = jnp.pad(onehot, ((0, G_pad - G), (0, 0)))                            # [G_pad, N]
    maskT = Mmask.T                                                              # [N, G_pad]

    data, d_offs = pack_data(X, P, Mmask, maskT)
    w_offs, _ = _weight_layout(C, H, D)

    kernel = make_kernel(N, C, H, D, G, G_pad, w_offs, d_offs)
    vmem = pl.BlockSpec(memory_space=pltpu.MemorySpace.VMEM)
    out = pl.pallas_call(
        kernel,
        out_shape=jax.ShapeDtypeStruct((G_pad, 128), jnp.float32),
        in_specs=[vmem, vmem, vmem],
        out_specs=vmem,
    )(data, wpk, bpk)
    return out[:G, :2]


# ----------------------------------------------------------------------------- reference / init
def init_params(key, in_channels=4, n_dense=32, gcn=16):
    keys = jax.random.split(key, 16)

    def w(k, shape):
        return (jax.random.normal(k, shape, jnp.float32) * 0.2).astype(jnp.float32)

    return dict(
        gw1=w(keys[0], (in_channels, gcn)), gb1=w(keys[1], (1, gcn)),
        gw2=w(keys[2], (gcn, gcn)),         gb2=w(keys[3], (1, gcn)),
        cw1=w(keys[4], (2 * gcn, n_dense)), cb1=w(keys[5], (1, n_dense)),
        cw2=w(keys[6], (n_dense, n_dense)), cb2=w(keys[7], (1, n_dense)),
        cw3=w(keys[8], (n_dense, 1)),       cb3=w(keys[9], (1, 1)),
        rw1=w(keys[10], (2 * gcn, n_dense)), rb1=w(keys[11], (1, n_dense)),
        rw2=w(keys[12], (n_dense, n_dense)), rb2=w(keys[13], (1, n_dense)),
        rw3=w(keys[14], (n_dense, 1)),       rb3=w(keys[15], (1, 1)),
    )


def reference_forward(params, X, edge_index, edge_weight, batching, num_graphs):
    """Pure-JAX reference mirroring the kernel's bf16-operand / f32-accumulate math."""
    N = X.shape[0]
    bf16, f32 = jnp.bfloat16, jnp.float32
    P = build_propagation_matrix(edge_index, edge_weight, N).astype(bf16)
    onehot = (batching[None, :] == jnp.arange(num_graphs)[:, None]).astype(f32)   # [G, N]
    counts = jnp.sum(onehot, axis=1, keepdims=True)

    def dot(a, b):
        return jnp.dot(a, b, preferred_element_type=f32)

    h = dot(P, dot(X.astype(bf16), params["gw1"].astype(bf16)).astype(bf16)) + params["gb1"]
    h = _leaky(h)
    h = dot(P, dot(h.astype(bf16), params["gw2"].astype(bf16)).astype(bf16)) + params["gb2"]
    h = _leaky(h)

    mean_out = dot(onehot.astype(bf16), h.astype(bf16)) / jnp.maximum(counts, 1.0)
    max_out = jnp.max(jnp.where(onehot[:, :, None] > 0.5, h[None, :, :], -1e30), axis=1)
    pooled = jnp.concatenate([mean_out, max_out], axis=1)

    def head(p):
        y = _leaky(dot(pooled.astype(bf16), params[p + "w1"].astype(bf16)) + params[p + "b1"])
        y = _leaky(dot(y.astype(bf16), params[p + "w2"].astype(bf16)) + params[p + "b2"])
        return dot(y.astype(bf16), params[p + "w3"].astype(bf16)) + params[p + "b3"]

    return jnp.concatenate([head("c"), head("r")], axis=1)


if __name__ == "__main__":
    key = jax.random.PRNGKey(0)
    kx, kg, ks, kd, kw, kp = jax.random.split(key, 6)

    in_channels = 4
    nodes_per_graph = 8
    num_graphs = 2
    N = nodes_per_graph * num_graphs
    E = 32
    n_dense, gcn = 32, 16

    # Node features [N, C]
    X = jax.random.normal(kx, (N, in_channels), jnp.float32)

    # Random intra-graph directed edges [2, E] + positive weights [E]
    graph_of_edge = jax.random.randint(kg, (E,), 0, num_graphs)
    src_local = jax.random.randint(ks, (E,), 0, nodes_per_graph)
    dst_local = jax.random.randint(kd, (E,), 0, nodes_per_graph)
    edge_index = jnp.stack([graph_of_edge * nodes_per_graph + src_local,
                            graph_of_edge * nodes_per_graph + dst_local]).astype(jnp.int32)
    edge_weight = jax.random.uniform(kw, (E,), jnp.float32, 0.1, 1.0)

    # Batch assignment per node [N]
    batching = jnp.repeat(jnp.arange(num_graphs, dtype=jnp.int32), nodes_per_graph)

    params = init_params(kp, in_channels=in_channels, n_dense=n_dense, gcn=gcn)

    # Weight/bias packing is hoisted out of the per-call path (weights are static).
    wpk, bpk = pack_params(params, in_channels, gcn, n_dense)

    out = model_forward(wpk, bpk, X, edge_index, edge_weight, batching,
                        num_graphs=num_graphs, n_dense=n_dense, gcn=gcn)
    out = jax.block_until_ready(out)

    ref = reference_forward(params, X, edge_index, edge_weight, batching, num_graphs)
    assert out.shape == (num_graphs, 2)
    assert jnp.allclose(out, ref, atol=1e-2, rtol=1e-2), (out, ref)

    print("KERNEL_OK")
</pallas_src>

<mosaic_0001>
module attributes {stable_mosaic.version = 11 : i64} {
  func.func private @main(%arg0: i32) attributes {dimension_semantics = [#tpu.dimension_semantics<core_parallel>], iteration_bounds = array<i64: 2>, tpu.core_type = #tpu.core_type<sc_scalar_subcore>, window_params = []} {
    return
  }
}

module attributes {stable_mosaic.version = 11 : i64} {
  func.func private @main(%arg0: i32) attributes {dimension_semantics = [#tpu.dimension_semantics<core_parallel>], iteration_bounds = array<i64: 2>, tpu.core_type = #tpu.core_type<sc_scalar_subcore>, window_params = []} {
    return
  }
}

module attributes {stable_mosaic.version = 11 : i64} {
  func.func @kernel(%arg0: memref<64x128xbf16, #tpu.memory_space<vmem>>, %arg1: memref<192x128xbf16, #tpu.memory_space<vmem>>, %arg2: memref<8x128xf32, #tpu.memory_space<vmem>>, %arg3: memref<8x128xf32, #tpu.memory_space<vmem>>) attributes {dimension_semantics = [], scalar_prefetch = 0 : i64, scratch_operands = 0 : i64, tpu.core_type = #tpu.core_type<tc>} {
    %c0 = arith.constant 0 : index
    %c0_0 = arith.constant 0 : index
    %0 = vector.load %arg0[%c0, %c0_0] : memref<64x128xbf16, #tpu.memory_space<vmem>>, vector<16x4xbf16>
    %c16 = arith.constant 16 : index
    %c0_1 = arith.constant 0 : index
    %1 = vector.load %arg0[%c16, %c0_1] : memref<64x128xbf16, #tpu.memory_space<vmem>>, vector<16x16xbf16>
    %c32 = arith.constant 32 : index
    %c0_2 = arith.constant 0 : index
    %2 = vector.load %arg0[%c32, %c0_2] : memref<64x128xbf16, #tpu.memory_space<vmem>>, vector<8x16xbf16>
    %c48 = arith.constant 48 : index
    %c0_3 = arith.constant 0 : index
    %3 = vector.load %arg0[%c48, %c0_3] : memref<64x128xbf16, #tpu.memory_space<vmem>>, vector<16x8xbf16>
    %4 = arith.extf %3 : vector<16x8xbf16> to vector<16x8xf32>
    %c0_4 = arith.constant 0 : index
    %c0_5 = arith.constant 0 : index
    %5 = vector.load %arg1[%c0_4, %c0_5] : memref<192x128xbf16, #tpu.memory_space<vmem>>, vector<4x16xbf16>
    %c16_6 = arith.constant 16 : index
    %c0_7 = arith.constant 0 : index
    %6 = vector.load %arg1[%c16_6, %c0_7] : memref<192x128xbf16, #tpu.memory_space<vmem>>, vector<16x16xbf16>
    %c32_8 = arith.constant 32 : index
    %c0_9 = arith.constant 0 : index
    %7 = vector.load %arg1[%c32_8, %c0_9] : memref<192x128xbf16, #tpu.memory_space<vmem>>, vector<16x64xbf16>
    %c48_10 = arith.constant 48 : index
    %c0_11 = arith.constant 0 : index
    %8 = vector.load %arg1[%c48_10, %c0_11] : memref<192x128xbf16, #tpu.memory_space<vmem>>, vector<16x64xbf16>
    %c64 = arith.constant 64 : index
    %c0_12 = arith.constant 0 : index
    %9 = vector.load %arg1[%c64, %c0_12] : memref<192x128xbf16, #tpu.memory_space<vmem>>, vector<64x64xbf16>
    %c128 = arith.constant 128 : index
    %c0_13 = arith.constant 0 : index
    %10 = vector.load %arg1[%c128, %c0_13] : memref<192x128xbf16, #tpu.memory_space<vmem>>, vector<64x128xbf16>
    %c0_14 = arith.constant 0 : index
    %c0_15 = arith.constant 0 : index
    %11 = vector.load %arg2[%c0_14, %c0_15] : memref<8x128xf32, #tpu.memory_space<vmem>>, vector<1x16xf32>
    %c1 = arith.constant 1 : index
    %c0_16 = arith.constant 0 : index
    %12 = vector.load %arg2[%c1, %c0_16] : memref<8x128xf32, #tpu.memory_space<vmem>>, vector<1x16xf32>
    %c2 = arith.constant 2 : index
    %c0_17 = arith.constant 0 : index
    %13 = vector.load %arg2[%c2, %c0_17] : memref<8x128xf32, #tpu.memory_space<vmem>>, vector<1x64xf32>
    %c3 = arith.constant 3 : index
    %c0_18 = arith.constant 0 : index
    %14 = vector.load %arg2[%c3, %c0_18] : memref<8x128xf32, #tpu.memory_space<vmem>>, vector<1x64xf32>
    %c4 = arith.constant 4 : index
    %c0_19 = arith.constant 0 : index
    %15 = vector.load %arg2[%c4, %c0_19] : memref<8x128xf32, #tpu.memory_space<vmem>>, vector<1x128xf32>
    %cst = arith.constant dense<0.000000e+00> : vector<16x16xf32>
    %16 = tpu.matmul %0, %5, %cst {dimension_numbers = #tpu.dot_dimension_numbers<[1], [0], [0], [1], [0, 0, 1, 1], [], []>} : vector<16x4xbf16>, vector<4x16xbf16>, vector<16x16xf32> -> vector<16x16xf32>
    %17 = arith.truncf %16 : vector<16x16xf32> to vector<16x16xbf16>
    %cst_20 = arith.constant dense<0.000000e+00> : vector<16x16xf32>
    %18 = tpu.matmul %1, %17, %cst_20 {dimension_numbers = #tpu.dot_dimension_numbers<[1], [0], [0], [1], [0, 0, 1, 1], [], []>} : vector<16x16xbf16>, vector<16x16xbf16>, vector<16x16xf32> -> vector<16x16xf32>
    %19 = vector.broadcast %11 : vector<1x16xf32> to vector<16x16xf32>
    %20 = arith.addf %18, %19 : vector<16x16xf32>
    %cst_21 = arith.constant 0.000000e+00 : f32
    %21 = vector.broadcast %cst_21 : f32 to vector<16x16xf32>
    %22 = arith.cmpf ogt, %20, %21 : vector<16x16xf32>
    %cst_22 = arith.constant 0.00999999977 : f32
    %23 = vector.broadcast %cst_22 : f32 to vector<16x16xf32>
    %24 = arith.mulf %23, %20 : vector<16x16xf32>
    %25 = arith.select %22, %20, %24 : vector<16x16xi1>, vector<16x16xf32>
    %26 = arith.truncf %25 : vector<16x16xf32> to vector<16x16xbf16>
    %cst_23 = arith.constant dense<0.000000e+00> : vector<16x16xf32>
    %27 = tpu.matmul %26, %6, %cst_23 {dimension_numbers = #tpu.dot_dimension_numbers<[1], [0], [0], [1], [0, 0, 1, 1], [], []>} : vector<16x16xbf16>, vector<16x16xbf16>, vector<16x16xf32> -> vector<16x16xf32>
    %28 = arith.truncf %27 : vector<16x16xf32> to vector<16x16xbf16>
    %cst_24 = arith.constant dense<0.000000e+00> : vector<16x16xf32>
    %29 = tpu.matmul %1, %28, %cst_24 {dimension_numbers = #tpu.dot_dimension_numbers<[1], [0], [0], [1], [0, 0, 1, 1], [], []>} : vector<16x16xbf16>, vector<16x16xbf16>, vector<16x16xf32> -> vector<16x16xf32>
    %30 = vector.broadcast %12 : vector<1x16xf32> to vector<16x16xf32>
    %31 = arith.addf %29, %30 : vector<16x16xf32>
    %cst_25 = arith.constant 0.000000e+00 : f32
    %32 = vector.broadcast %cst_25 : f32 to vector<16x16xf32>
    %33 = arith.cmpf ogt, %31, %32 : vector<16x16xf32>
    %cst_26 = arith.constant 0.00999999977 : f32
    %34 = vector.broadcast %cst_26 : f32 to vector<16x16xf32>
    %35 = arith.mulf %34, %31 : vector<16x16xf32>
    %36 = arith.select %33, %31, %35 : vector<16x16xi1>, vector<16x16xf32>
    %37 = arith.extf %2 : vector<8x16xbf16> to vector<8x16xf32>
    %cst_27 = arith.constant dense<0.000000e+00> : vector<8xf32>
    %38 = vector.multi_reduction <add>, %37, %cst_27 [1] : vector<8x16xf32> to vector<8xf32>
    %39 = vector.shape_cast %38 : vector<8xf32> to vector<8x1xf32>
    %cst_28 = arith.constant 0.000000e+00 : f32
    %40 = vector.broadcast %cst_28 : f32 to vector<8x1xf32>
    %41 = arith.cmpf ogt, %39, %40 : vector<8x1xf32>
    %cst_29 = arith.constant 1.000000e+00 : f32
    %42 = vector.broadcast %cst_29 : f32 to vector<8x1xf32>
    %43 = arith.maximumf %39, %42 : vector<8x1xf32>
    %cst_30 = arith.constant 1.000000e+00 : f32
    %44 = vector.broadcast %cst_30 : f32 to vector<8x1xf32>
    %45 = arith.divf %44, %43 : vector<8x1xf32>
    %cst_31 = arith.constant 0.000000e+00 : f32
    %46 = vector.broadcast %cst_31 : f32 to vector<8x1xf32>
    %47 = arith.select %41, %45, %46 : vector<8x1xi1>, vector<8x1xf32>
    %48 = arith.truncf %36 : vector<16x16xf32> to vector<16x16xbf16>
    %cst_32 = arith.constant dense<0.000000e+00> : vector<8x16xf32>
    %49 = tpu.matmul %2, %48, %cst_32 {dimension_numbers = #tpu.dot_dimension_numbers<[1], [0], [0], [1], [0, 0, 1, 1], [], []>} : vector<8x16xbf16>, vector<16x16xbf16>, vector<8x16xf32> -> vector<8x16xf32>
    %50 = vector.broadcast %47 : vector<8x1xf32> to vector<8x16xf32>
    %51 = arith.mulf %49, %50 : vector<8x16xf32>
    %52 = tpu.iota {dimensions = array<i32: 0>} : vector<8x16xi32>
    %cst_33 = arith.constant 0.000000e+00 : f32
    %53 = vector.broadcast %cst_33 : f32 to vector<8x16xf32>
    %54 = vector.extract_strided_slice %4 {offsets = [0, 0], sizes = [16, 1], strides = [1, 1]} : vector<16x8xf32> to vector<16x1xf32>
    %cst_34 = arith.constant 1.000000e+00 : f32
    %55 = vector.broadcast %cst_34 : f32 to vector<16x1xf32>
    %56 = arith.subf %54, %55 : vector<16x1xf32>
    %cst_35 = arith.constant 1.000000e+30 : f32
    %57 = vector.broadcast %cst_35 : f32 to vector<16x1xf32>
    %58 = arith.mulf %56, %57 : vector<16x1xf32>
    %59 = vector.broadcast %58 : vector<16x1xf32> to vector<16x16xf32>
    %60 = arith.addf %36, %59 : vector<16x16xf32>
    %cst_36 = arith.constant dense<0xFF800000> : vector<16xf32>
    %61 = vector.multi_reduction <maximumf>, %60, %cst_36 [0] : vector<16x16xf32> to vector<16xf32>
    %62 = vector.shape_cast %61 : vector<16xf32> to vector<1x16xf32>
    %63 = vector.extract_strided_slice %39 {offsets = [0, 0], sizes = [1, 1], strides = [1, 1]} : vector<8x1xf32> to vector<1x1xf32>
    %cst_37 = arith.constant 0.000000e+00 : f32
    %64 = vector.broadcast %cst_37 : f32 to vector<1x1xf32>
    %65 = arith.cmpf ogt, %63, %64 : vector<1x1xf32>
    %cst_38 = arith.constant 0.000000e+00 : f32
    %66 = vector.shape_cast %65 : vector<1x1xi1> to vector<1x1xi1>
    %67 = vector.broadcast %66 : vector<1x1xi1> to vector<1x16xi1>
    %68 = vector.broadcast %cst_38 : f32 to vector<1x16xf32>
    %69 = arith.select %67, %62, %68 : vector<1x16xi1>, vector<1x16xf32>
    %c0_i32 = arith.constant 0 : i32
    %70 = vector.broadcast %c0_i32 : i32 to vector<8x16xi32>
    %71 = arith.cmpi eq, %52, %70 : vector<8x16xi32>
    %72 = vector.shape_cast %69 : vector<1x16xf32> to vector<1x16xf32>
    %73 = vector.broadcast %72 : vector<1x16xf32> to vector<8x16xf32>
    %74 = arith.select %71, %73, %53 : vector<8x16xi1>, vector<8x16xf32>
    %75 = vector.extract_strided_slice %4 {offsets = [0, 1], sizes = [16, 1], strides = [1, 1]} : vector<16x8xf32> to vector<16x1xf32>
    %cst_39 = arith.constant 1.000000e+00 : f32
    %76 = vector.broadcast %cst_39 : f32 to vector<16x1xf32>
    %77 = arith.subf %75, %76 : vector<16x1xf32>
    %cst_40 = arith.constant 1.000000e+30 : f32
    %78 = vector.broadcast %cst_40 : f32 to vector<16x1xf32>
    %79 = arith.mulf %77, %78 : vector<16x1xf32>
    %80 = vector.broadcast %79 : vector<16x1xf32> to vector<16x16xf32>
    %81 = arith.addf %36, %80 : vector<16x16xf32>
    %cst_41 = arith.constant dense<0xFF800000> : vector<16xf32>
    %82 = vector.multi_reduction <maximumf>, %81, %cst_41 [0] : vector<16x16xf32> to vector<16xf32>
    %83 = vector.shape_cast %82 : vector<16xf32> to vector<1x16xf32>
    %84 = vector.extract_strided_slice %39 {offsets = [1, 0], sizes = [1, 1], strides = [1, 1]} : vector<8x1xf32> to vector<1x1xf32>
    %cst_42 = arith.constant 0.000000e+00 : f32
    %85 = vector.broadcast %cst_42 : f32 to vector<1x1xf32>
    %86 = arith.cmpf ogt, %84, %85 : vector<1x1xf32>
    %cst_43 = arith.constant 0.000000e+00 : f32
    %87 = vector.shape_cast %86 : vector<1x1xi1> to vector<1x1xi1>
    %88 = vector.broadcast %87 : vector<1x1xi1> to vector<1x16xi1>
    %89 = vector.broadcast %cst_43 : f32 to vector<1x16xf32>
    %90 = arith.select %88, %83, %89 : vector<1x16xi1>, vector<1x16xf32>
    %c1_i32 = arith.constant 1 : i32
    %91 = vector.broadcast %c1_i32 : i32 to vector<8x16xi32>
    %92 = arith.cmpi eq, %52, %91 : vector<8x16xi32>
    %93 = vector.shape_cast %90 : vector<1x16xf32> to vector<1x16xf32>
    %94 = vector.broadcast %93 : vector<1x16xf32> to vector<8x16xf32>
    %95 = arith.select %92, %94, %74 : vector<8x16xi1>, vector<8x16xf32>
    %96 = arith.truncf %51 : vector<8x16xf32> to vector<8x16xbf16>
    %cst_44 = arith.constant dense<0.000000e+00> : vector<8x64xf32>
    %97 = tpu.matmul %96, %7, %cst_44 {dimension_numbers = #tpu.dot_dimension_numbers<[1], [0], [0], [1], [0, 0, 1, 1], [], []>} : vector<8x16xbf16>, vector<16x64xbf16>, vector<8x64xf32> -> vector<8x64xf32>
    %98 = arith.truncf %95 : vector<8x16xf32> to vector<8x16xbf16>
    %cst_45 = arith.constant dense<0.000000e+00> : vector<8x64xf32>
    %99 = tpu.matmul %98, %8, %cst_45 {dimension_numbers = #tpu.dot_dimension_numbers<[1], [0], [0], [1], [0, 0, 1, 1], [], []>} : vector<8x16xbf16>, vector<16x64xbf16>, vector<8x64xf32> -> vector<8x64xf32>
    %100 = arith.addf %97, %99 : vector<8x64xf32>
    %101 = vector.broadcast %13 : vector<1x64xf32> to vector<8x64xf32>
    %102 = arith.addf %100, %101 : vector<8x64xf32>
    %cst_46 = arith.constant 0.000000e+00 : f32
    %103 = vector.broadcast %cst_46 : f32 to vector<8x64xf32>
    %104 = arith.cmpf ogt, %102, %103 : vector<8x64xf32>
    %cst_47 = arith.constant 0.00999999977 : f32
    %105 = vector.broadcast %cst_47 : f32 to vector<8x64xf32>
    %106 = arith.mulf %105, %102 : vector<8x64xf32>
    %107 = arith.select %104, %102, %106 : vector<8x64xi1>, vector<8x64xf32>
    %108 = arith.truncf %107 : vector<8x64xf32> to vector<8x64xbf16>
    %cst_48 = arith.constant dense<0.000000e+00> : vector<8x64xf32>
    %109 = tpu.matmul %108, %9, %cst_48 {dimension_numbers = #tpu.dot_dimension_numbers<[1], [0], [0], [1], [0, 0, 1, 1], [], []>} : vector<8x64xbf16>, vector<64x64xbf16>, vector<8x64xf32> -> vector<8x64xf32>
    %110 = vector.broadcast %14 : vector<1x64xf32> to vector<8x64xf32>
    %111 = arith.addf %109, %110 : vector<8x64xf32>
    %cst_49 = arith.constant 0.000000e+00 : f32
    %112 = vector.broadcast %cst_49 : f32 to vector<8x64xf32>
    %113 = arith.cmpf ogt, %111, %112 : vector<8x64xf32>
    %cst_50 = arith.constant 0.00999999977 : f32
    %114 = vector.broadcast %cst_50 : f32 to vector<8x64xf32>
    %115 = arith.mulf %114, %111 : vector<8x64xf32>
    %116 = arith.select %113, %111, %115 : vector<8x64xi1>, vector<8x64xf32>
    %117 = arith.truncf %116 : vector<8x64xf32> to vector<8x64xbf16>
    %cst_51 = arith.constant dense<0.000000e+00> : vector<8x128xf32>
    %118 = tpu.matmul %117, %10, %cst_51 {dimension_numbers = #tpu.dot_dimension_numbers<[1], [0], [0], [1], [0, 0, 1, 1], [], []>} : vector<8x64xbf16>, vector<64x128xbf16>, vector<8x128xf32> -> vector<8x128xf32>
    %119 = vector.broadcast %15 : vector<1x128xf32> to vector<8x128xf32>
    %120 = arith.addf %118, %119 : vector<8x128xf32>
    %c0_52 = arith.constant 0 : index
    %c0_53 = arith.constant 0 : index
    %121 = vector.load %arg3[%c0_52, %c0_53] : memref<8x128xf32, #tpu.memory_space<vmem>>, vector<8x128xf32>
    tpu.vector_store %arg3[%c0_52, %c0_53], %120 {strides = array<i32>} : memref<8x128xf32, #tpu.memory_space<vmem>>, vector<8x128xf32>,
    return
  }
}

</mosaic_0001>

<bundles_post_ra>
// kernel: model_forward.1
= control target key start
LH: loop header
LB: loop body
LE: loop exit
PB: predicated region body
PF: predicated region fallthrough
CT: control target
= control target key end

     0   :  { %vm61_vm0 = vcmask 1041408   ;;  %vm57_vm1 = vcmask 31744   ;;  %v794_v0 = vmov 0.0   ;;  %vm795_vm2 = vmmov 0   ;;  %s944_s1 = inlined_call_operand.vmem [shape: bf16[192,128], index: 1, kind: input, shape index: {}]   ;;  %s945_s0 = inlined_call_operand.vmem [shape: bf16[64,128], index: 0, kind: input, shape index: {}]   ;;  %s946_s2 = inlined_call_operand.vmem [shape: f32[8,128], index: 2, kind: input, shape index: {}]   ;;  %s947_s3 = inlined_call_operand.vmem [shape: f32[8,128], index: 3, kind: output, shape index: {}]  }
   0x1   :  { %705 = vmatprep.subr.bf16.mxu0 %v794_v0  ;;  %v24_v1 = vld [vmem:[%s944_s1] sm:$0x3]  ;;  %707 = vmatprep.mubr.msk.bf16.mxu0 %vm795_vm2, %v794_v0  ;;  %v780_v9 = vld [vmem:[%s945_s0 + $0x8] sm:$0xff]   ;;  %vm116_vm3 = vcmask 130048   ;;  %v853_v23 = vld [vmem:[%s945_s0 + $0x10] sm:$0xf] }
   0x2   :  { %v63_v2 = vsel %vm61_vm0, %v24_v1, 0  ;;  %v779_v3 = vld [vmem:[%s945_s0] sm:$0xff]   ;;  %711 = vmatprep.subr.bf16.mxu1 %v794_v0  ;;  %713 = vmatprep.mubr.msk.bf16.mxu1 %vm795_vm2, %v794_v0  ;;  %v781_v10 = vld [vmem:[%s944_s1 + $0x8] sm:$0xff]   ;;  %v680_v24 = vld [vmem:[%s945_s0 + $0x18] sm:$0xff]   ;;  %v270_v25 = vunpack.c.l.bf16 %v853_v23  ;;  %v796_v26 = vmov 0   ;;  %v797_v34 = vmov 1  }
   0x3   :  { %706 = vmatpush3.bf16.msra.mxu0 %v63_v2  ;;  %v649_v11 = vld [vmem:[%s946_s2] ss:$0 sm:$0xff]  ;;  %776 = vset.pattern.permute.xlu1 %v796_v26  ;;  %v679_v27 = vunpack.c.h.bf16 %v680_v24  ;;  %v678_v28 = vunpack.c.l.bf16 %v680_v24  ;;  %v782_v40 = vld [vmem:[%s944_s1 + $0x18] sm:$0xff]   ;;  %v654_v43 = vld [vmem:[%s946_s2 + $0x1] ss:$0 sm:$0xff]  ;;  %vm523_vm12 = vcmask 523264  }
   0x4   :  { %717 = vmatprep.subr.bf16.mxu0 %v794_v0  ;;  %775 = vset.pattern.permute.xlu0 %v796_v26  ;;  %v271_v29 = vsel %vm116_vm3, %v270_v25, 0.0 }
   0x5   :  { %v658_v30 = vadd.f32 -1.0, %v679_v27  ;;  %272 = vadd.xlane.f32.xlu0 %v271_v29  ;;  %v657_v31 = vadd.f32 -1.0, %v678_v28  ;;  %v783_v28 = vld [vmem:[%s944_s1 + $0x10] sm:$0xff]   ;;  %v784_v29 = vld [vmem:[%s944_s1 + $0x20] sm:$0xff]  }
   0x6   :  { %708 = vmatmul.mubr.msk.bf16.vlgmr.msra.gmra.mrb[0].mxu0 %vm57_vm1, %v779_v3 }
   0x7   :  { %719 = vmatprep.mubr.msk.bf16.mxu0 %vm795_vm2, %v794_v0  ;;  %718 = vmatpush3.bf16.msra.mxu0 %v781_v10  ;;  %v329_v32 = vmul.f32 1e+30, %v658_v30  ;;  %v328_v33 = vmul.f32 1e+30, %v657_v31  ;;  %v785_v30 = vld [vmem:[%s944_s1 + $0x28] sm:$0xff]  }
   0x8   :  { %729 = vmatprep.subr.bf16.mxu0 %v794_v0 }
   0x9   :  { %337 = vperm.xlu1 %776, %v329_v32  }
   0xd   :  { %777 = vset.pattern.permute.xlu1 %v797_v34 }
   0xe   :  { %361 = vperm.xlu1 %777, %v328_v33  }
  0x12   :  { %365 = vperm.xlu1 %777, %v329_v32  }
  0x1b   :  { %332 = vperm.xlu0 %775, %v328_v33  }
  0x1f   :  { %778 = vset.pattern.permute.xlu0 %v797_v34 }
  0x88   :  { %v338_v41 = vpop.permute.xlu1 %337 }
  0x8d   :  { %v362_v45 = vpop.permute.xlu1 %361 }
  0x91   :  { %v366_v56 = vpop.permute.xlu1 %365 }
  0x92   :  { %v868_v42 = vpop.xlane.xlu0 %272 }
  0x93   :  { %vm274_vm8 = vcmp.gt.f32.partialorder %v868_v42, 0.0  ;;  %v275_v31 = vmax.f32 %v868_v42, 1.0  ;;  %v786_v42 = vld [vmem:[%s944_s1 + $0x30] sm:$0xff]  }
  0x95   :  { %792 = vrcp.f32 %v275_v31 }
  0x9a   :  { %v333_v52 = vpop.permute.xlu0 %332 }
  0x9f   :  { %v793_v32 = vpop.eup %792 }
  0xa0   :  { %v278_v33 = vsel %vm274_vm8, %v793_v32, 0.0 }
  0xd9   :  { %v99_v4 = vpop.f32.mrb[0].mxu0 }
  0xda   :  { %v709_v5 = vpop.f32.mrb[1].mxu0 }
  0xdb   :  { %v102_v6 = vpop.f32.mrb[2].mxu0 }
  0xdc   :  { %v106_v7 = vpack.c.bf16 %v102_v6, %v99_v4  ;;  %v710_v8 = vpop.f32.mrb[3].mxu0  ;;  %v324_v6 = vlaneseq }
  0xde   :  { %712 = vmatpush3.bf16.msra.mxu1 %v106_v7 }
  0xdf   :  { %723 = vmatprep.subr.bf16.mxu1 %v794_v0 }
  0xe1   :  { %714 = vmatmul.mubr.msk.bf16.vlgmr.msra.gmra.mrb[0].mxu1 %vm116_vm3, %v780_v9 }
  0xe2   :  { %725 = vmatprep.mubr.msk.bf16.mxu1 %vm795_vm2, %v794_v0 }
 0x1b4   :  { %v154_v12 = vpop.f32.mrb[0].mxu1 }
 0x1b5   :  { %v155_v13 = vadd.f32 %v649_v11, %v154_v12  ;;  %v715_v14 = vpop.f32.mrb[1].mxu1 }
 0x1b6   :  { %v157_v15 = vpop.f32.mrb[2].mxu1 }
 0x1b7   :  { %v163_v16 = vmul.f32 0.01, %v155_v13  ;;  %v158_v17 = vadd.f32 %v649_v11, %v157_v15  ;;  %v716_v18 = vpop.f32.mrb[3].mxu1  ;;  %vm161_vm4 = vcmp.gt.f32.partialorder %v155_v13, 0.0  ;;  %v325_v11 = vshrl.u32 %v324_v6, 7 }
 0x1b9   :  { %vm162_vm5 = vcmp.gt.f32.partialorder %v158_v17, 0.0  ;;  %v164_v19 = vmul.f32 0.01, %v158_v17  ;;  %v165_v20 = vsel %vm161_vm4, %v155_v13, %v163_v16  ;;  %v383_v18 = vsub.s32 1, %v325_v11 }
 0x1ba   :  { %vm354_vm9 = vcmp.eq.s32.totalorder %v325_v11, 0  ;;  %vm380_vm10 = vcmp.eq.s32.totalorder %v325_v11, 1 }
 0x1bb   :  { %v166_v21 = vsel %vm162_vm5, %v158_v17, %v164_v19  ;;  %v357_v17 = vsub.s32 0, %v325_v11 }
 0x1bc   :  { %v167_v22 = vpack.c.bf16 %v166_v21, %v165_v20 }
 0x1be   :  { %720 = vmatmul.mubr.msk.bf16.vlgmr.msra.gmra.mrb[4].mxu0 %vm116_vm3, %v167_v22 }
 0x1bf   :  { %731 = vmatprep.mubr.msk.bf16.mxu0 %vm795_vm2, %v794_v0 }
 0x291   :  { %v211_v35 = vpop.f32.mrb[4].mxu0 }
 0x292   :  { %v721_v36 = vpop.f32.mrb[5].mxu0 }
 0x293   :  { %v214_v37 = vpop.f32.mrb[6].mxu0 }
 0x294   :  { %v218_v38 = vpack.c.bf16 %v214_v37, %v211_v35  ;;  %v722_v39 = vpop.f32.mrb[7].mxu0 }
 0x296   :  { %724 = vmatpush3.bf16.msra.mxu1 %v218_v38 }
 0x297   :  { %735 = vmatprep.subr.bf16.mxu1 %v794_v0 }
 0x299   :  { %726 = vmatmul.mubr.msk.bf16.vlgmr.msra.gmra.mrb[4].mxu1 %vm116_vm3, %v780_v9 }
 0x29a   :  { %737 = vmatprep.mubr.msk.bf16.mxu1 %vm795_vm2, %v794_v0  ;;  %736 = vmatpush3.bf16.msra.mxu1 %v782_v40 }
 0x29b   :  { %747 = vmatprep.subr.bf16.mxu1 %v794_v0 }
 0x36c   :  { %v257_v44 = vpop.f32.mrb[4].mxu1 }
 0x36d   :  { %v258_v46 = vadd.f32 %v654_v43, %v257_v44  ;;  %v727_v47 = vpop.f32.mrb[5].mxu1 }
 0x36e   :  { %v260_v48 = vpop.f32.mrb[6].mxu1  ;;  %v789_v47 = vld [vmem:[%s944_s1 + $0x48] sm:$0xff]  }
 0x36f   :  { %v266_v49 = vmul.f32 0.01, %v258_v46  ;;  %v261_v50 = vadd.f32 %v654_v43, %v260_v48  ;;  %vm264_vm6 = vcmp.gt.f32.partialorder %v258_v46, 0.0  ;;  %v728_v51 = vpop.f32.mrb[7].mxu1  ;;  %v663_v48 = vld [vmem:[%s946_s2 + $0x2] ss:$0 sm:$0xff] }
 0x371   :  { %v267_v53 = vmul.f32 0.01, %v261_v50  ;;  %v268_v54 = vsel %vm264_vm6, %v258_v46, %v266_v49  ;;  %vm265_vm7 = vcmp.gt.f32.partialorder %v261_v50, 0.0  ;;  %v788_v46 = vld [vmem:[%s944_s1 + $0x40] sm:$0xff]  }
 0x372   :  { %v340_v55 = vadd.f32 %v333_v52, %v268_v54  ;;  %v368_v57 = vadd.f32 %v362_v45, %v268_v54  ;;  %v787_v45 = vld [vmem:[%s944_s1 + $0x38] sm:$0xff]  }
 0x373   :  { %v269_v58 = vsel %vm265_vm7, %v261_v50, %v267_v53 }
 0x374   :  { %v279_v59 = vpack.c.bf16 %v269_v58, %v268_v54  ;;  %v341_v60 = vadd.f32 %v338_v41, %v269_v58  ;;  %v369_v61 = vadd.f32 %v366_v56, %v269_v58  ;;  %v342_v62 = vsel %vm116_vm3, %v340_v55, -inf  ;;  %v790_v58 = vld [vmem:[%s944_s1 + $0x50] sm:$0xff]  }
 0x375   :  { %v370_v1 = vsel %vm116_vm3, %v368_v57, -inf }
 0x376   :  { %v343_v63 = vsel %vm116_vm3, %v341_v60, -inf  ;;  %730 = vmatpush3.bf16.msra.mxu0 %v279_v59  ;;  %v371_v3 = vsel %vm116_vm3, %v369_v61, -inf  ;;  %v791_v59 = vld [vmem:[%s944_s1 + $0x58] sm:$0xff]   ;;  %v664_v60 = vld [vmem:[%s946_s2 + $0x3] ss:$0 sm:$0xff] }
 0x377   :  { %v344_v2 = vmax.f32 %v342_v62, %v343_v63  ;;  %741 = vmatprep.subr.bf16.mxu0 %v794_v0  ;;  %v372_v4 = vmax.f32 %v370_v1, %v371_v3 }
 0x379   :  { %v345_v5 = vrot.slane %v344_v2, 4  ;;  %732 = vmatmul.mubr.msk.bf16.vlgmr.msra.gmra.mrb[8].mxu0 %vm116_vm3, %v853_v23  ;;  %v373_v7 = vrot.slane %v372_v4, 4 }
 0x37a   :  { %743 = vmatprep.mubr.msk.bf16.mxu0 %vm795_vm2, %v794_v0  ;;  %742 = vmatpush3.bf16.msra.mxu0 %v783_v28 }
 0x37b   :  { %v346_v8 = vmax.f32 %v344_v2, %v345_v5  ;;  %v374_v9 = vmax.f32 %v372_v4, %v373_v7  ;;  %759 = vmatprep.subr.bf16.mxu0 %v794_v0 }
 0x37d   :  { %v347_v10 = vrot.slane %v346_v8, 2  ;;  %v375_v12 = vrot.slane %v374_v9, 2 }
 0x37f   :  { %v348_v13 = vmax.f32 %v346_v8, %v347_v10  ;;  %v376_v14 = vmax.f32 %v374_v9, %v375_v12 }
 0x381   :  { %v349_v15 = vrot.slane %v348_v13, 1  ;;  %v377_v16 = vrot.slane %v376_v14, 1 }
 0x383   :  { %v350_v19 = vmax.f32 %v348_v13, %v349_v15  ;;  %v378_v20 = vmax.f32 %v376_v14, %v377_v16 }
 0x385   :  { %v353_v21 = vsel %vm274_vm8, %v350_v19, 0.0  ;;  %v379_v22 = vsel %vm274_vm8, %v378_v20, 0.0 }
 0x386   :  { %v358_v23 = vrot.slane %v353_v21, %v357_v17  ;;  %v384_v24 = vrot.slane %v379_v22, %v383_v18 }
 0x388   :  { %v359_v25 = vsel %vm354_vm9, %v358_v23, 0.0 }
 0x389   :  { %v385_v26 = vsel %vm380_vm10, %v384_v24, %v359_v25 }
 0x38a   :  { %v387_v27 = vpack.c.bf16 %v385_v26, %v385_v26 }
 0x38c   :  { %738 = vmatmul.mubr.msk.bf16.vlgmr.msra.gmra.mrb[8].mxu1 %vm116_vm3, %v387_v27 }
 0x38d   :  { %755 = vmatprep.mubr.msk.bf16.mxu1 %vm795_vm2, %v794_v0  ;;  %748 = vmatpush3.bf16.msra.mxu1 %v784_v29 }
 0x38e   :  { %749 = vmatprep.subr.bf16.mxu1 %v794_v0 }
 0x391   :  { %750 = vmatpush3.bf16.msra.mxu1 %v785_v30 }
 0x392   :  { %751 = vmatprep.subr.bf16.mxu1 %v794_v0 }
 0x395   :  { %752 = vmatpush3.bf16.msra.mxu1 %v786_v42 }
 0x396   :  { %753 = vmatprep.subr.bf16.mxu1 %v794_v0 }
 0x399   :  { %754 = vmatpush3.bf16.msra.mxu1 %v787_v45 }
 0x44c   :  { %v317_v34 = vpop.f32.mrb[8].mxu0 }
 0x44d   :  { %v323_v35 = vmul.f32 %v317_v34, %v278_v33  ;;  %v733_v36 = vpop.f32.mrb[9].mxu0 }
 0x44e   :  { %v320_v37 = vpop.f32.mrb[10].mxu0 }
 0x44f   :  { %v386_v38 = vpack.c.bf16 %v323_v35, %v323_v35  ;;  %v734_v39 = vpop.f32.mrb[11].mxu0 }
 0x451   :  { %744 = vmatmul.mubr.msk.bf16.vlgmr.msra.gmra.mrb[12].mxu0 %vm116_vm3, %v386_v38 }
 0x452   :  { %767 = vmatprep.mubr.msk.bf16.mxu0 %vm795_vm2, %v794_v0  ;;  %760 = vmatpush3.bf16.msra.mxu0 %v788_v46 }
 0x453   :  { %761 = vmatprep.subr.bf16.mxu0 %v794_v0 }
 0x456   :  { %762 = vmatpush3.bf16.msra.mxu0 %v789_v47 }
 0x457   :  { %763 = vmatprep.subr.bf16.mxu0 %v794_v0 }
 0x45a   :  { %764 = vmatpush3.bf16.msra.mxu0 %v790_v58 }
 0x45b   :  { %765 = vmatprep.subr.bf16.mxu0 %v794_v0  ;;  %v670_v0 = vld [vmem:[%s946_s2 + $0x4] ss:$0 sm:$0xff] }
 0x45e   :  { %766 = vmatpush3.bf16.msra.mxu0 %v791_v59 }
 0x45f   :  { %v431_v40 = vpop.f32.mrb[8].mxu1 }
 0x460   :  { %v739_v41 = vpop.f32.mrb[9].mxu1 }
 0x461   :  { %v434_v43 = vpop.f32.mrb[10].mxu1 }
 0x462   :  { %v740_v44 = vpop.f32.mrb[11].mxu1 }
 0x524   :  { %v480_v49 = vpop.f32.mrb[12].mxu0 }
 0x525   :  { %v481_v50 = vadd.f32 %v480_v49, %v431_v40  ;;  %v745_v51 = vpop.f32.mrb[13].mxu0 }
 0x526   :  { %v483_v52 = vpop.f32.mrb[14].mxu0 }
 0x527   :  { %v490_v53 = vadd.f32 %v663_v48, %v481_v50  ;;  %v746_v54 = vpop.f32.mrb[15].mxu0 }
 0x529   :  { %vm491_vm11 = vcmp.gt.f32.partialorder %v490_v53, 0.0  ;;  %v492_v55 = vmul.f32 0.01, %v490_v53 }
 0x52b   :  { %v493_v56 = vsel %vm491_vm11, %v490_v53, %v492_v55 }
 0x52c   :  { %v494_v57 = vpack.c.bf16 %v493_v56, %v493_v56 }
 0x52e   :  { %756 = vmatmul.mubr.msk.bf16.vlgmr.msra.gmra.mrb[12].mxu1 %vm523_vm12, %v494_v57 }
 0x601   :  { %v561_v61 = vpop.f32.mrb[12].mxu1 }
 0x602   :  { %v562_v62 = vadd.f32 %v664_v60, %v561_v61  ;;  %v757_v63 = vpop.f32.mrb[13].mxu1 }
 0x603   :  { %v564_v1 = vpop.f32.mrb[14].mxu1 }
 0x604   :  { %vm567_vm13 = vcmp.gt.f32.partialorder %v562_v62, 0.0  ;;  %v568_v2 = vmul.f32 0.01, %v562_v62  ;;  %v758_v3 = vpop.f32.mrb[15].mxu1 }
 0x606   :  { %v569_v4 = vsel %vm567_vm13, %v562_v62, %v568_v2 }
 0x607   :  { %v570_v5 = vpack.c.bf16 %v569_v4, %v569_v4 }
 0x609   :  { %768 = vmatmul.mubr.msk.bf16.vlgmr.msra.gmra.mrb[16].mxu0 %vm523_vm12, %v570_v5 }
 0x6dc   :  { %v636_v6 = vpop.f32.mrb[16].mxu0 }
 0x6dd   :  { %v637_v7 = vadd.f32 %v670_v0, %v636_v6  ;;  %v769_v8 = vpop.f32.mrb[17].mxu0 }
 0x6de   :  { %v639_v9 = vpop.f32.mrb[18].mxu0 }
 0x6df   :  { %642 = vst [vmem:[%s947_s3] sm:$0xff] %v637_v7  ;;  %v770_v10 = vpop.f32.mrb[19].mxu0 }

</bundles_post_ra>
